<compile_context>
chip_gen: v7x
topology: tpu7x:2x2x1
jax: 0.10.0
libtpu: 0.0.40
codegen_flags: <defaults>
</compile_context>

<pallas_src>
import functools

import jax
import jax.numpy as jnp
from jax.experimental import pallas as pl
from jax.experimental.pallas import tpu as pltpu

LATENT_SIZE = 10
HIDDEN_SIZE = 256
OUTPUT_SIZE = 784   # e.g. 28*28 MNIST-style VAE output
BATCH = 16


def _round_up(x, m):
    return ((x + m - 1) // m) * m


def decoder_kernel(x_ref, w1_ref, b1_ref, w2_ref, b2_ref, o_ref):
    # fc1: bf16 MXU inputs, f32 accumulation; bias + ReLU in f32 (v5e has no bf16 VPU)
    x = x_ref[...].astype(jnp.bfloat16)
    h = jnp.dot(x, w1_ref[...], preferred_element_type=jnp.float32)
    h = jnp.maximum(h + b1_ref[...], 0.0)
    # fc2: bf16 MXU inputs, f32 accumulation; sigmoid in f32; store true-width output
    z = jnp.dot(h.astype(jnp.bfloat16), w2_ref[...],
                preferred_element_type=jnp.float32)
    o_ref[...] = jax.nn.sigmoid(z + b2_ref[...]).astype(o_ref.dtype)


def prepare_decoder_params(w1, b1, w2, b2):
    """One-time parameter prep (do NOT call per forward): cast weights to bf16
    (MXU-native, halves streamed weight bytes), keep biases f32 and 2-D."""
    return (w1.astype(jnp.bfloat16),
            b1.reshape(1, -1).astype(jnp.float32),
            w2.astype(jnp.bfloat16),
            b2.reshape(1, -1).astype(jnp.float32))


@functools.partial(jax.jit, static_argnames=("block_rows",))
def decoder_forward(x, w1b, b1, w2b, b2, *, block_rows=1024):
    """x: (B, latent) f32; w1b: (latent, 256) bf16; b1: (1, 256) f32;
    w2b: (256, out) bf16; b2: (1, out) f32. Returns (B, out) f32."""
    B, latent = x.shape
    hidden = w1b.shape[1]
    out_features = w2b.shape[1]

    # Pad batch only to a multiple of 8 (sublane rule); ragged last tile is fine.
    b_padded = _round_up(B, 8)
    if b_padded != B:
        x = jnp.pad(x, ((0, b_padded - B), (0, 0)))

    # Row tile: multiple of 8 always; split into >=2 tiles once the batch is big
    # enough that each tile still has a decent MXU M-dim (feeds both v7x TCs).
    block_rows = max(8, _round_up(block_rows, 8))
    if b_padded >= 256:
        target_tm = _round_up(pl.cdiv(b_padded, 2), 8)
    else:
        target_tm = b_padded
    tm = min(block_rows, target_tm)
    num_tiles = pl.cdiv(b_padded, tm)

    flops = 2 * b_padded * (latent * hidden + hidden * out_features)
    bytes_accessed = (
        b_padded * latent * 4              # x (f32)
        + w1b.size * 2 + w2b.size * 2      # bf16 weights (resident, DMA'd once)
        + b1.size * 4 + b2.size * 4        # f32 biases
        + b_padded * out_features * 4      # output (f32)
    )

    out_full = pl.pallas_call(
        decoder_kernel,
        out_shape=jax.ShapeDtypeStruct((b_padded, out_features), jnp.float32),
        grid=(num_tiles,),
        in_specs=[
            pl.BlockSpec((tm, latent), lambda i: (i, 0)),           # x: streamed per tile
            pl.BlockSpec((latent, hidden), lambda i: (0, 0)),       # w1: resident
            pl.BlockSpec((1, hidden), lambda i: (0, 0)),            # b1: resident
            pl.BlockSpec((hidden, out_features), lambda i: (0, 0)),  # w2: resident
            pl.BlockSpec((1, out_features), lambda i: (0, 0)),      # b2: resident
        ],
        out_specs=pl.BlockSpec((tm, out_features), lambda i: (i, 0)),
        compiler_params=pltpu.CompilerParams(
            dimension_semantics=("parallel",),   # shard batch tiles across TCs (v7x)
            vmem_limit_bytes=32 * 1024 * 1024,
        ),
        cost_estimate=pl.CostEstimate(
            flops=flops,
            transcendentals=b_padded * out_features,  # sigmoid exp
            bytes_accessed=bytes_accessed,
        ),
    )(x, w1b, b1, w2b, b2)

    # Row slice only when the batch actually needed padding (no-op otherwise).
    if b_padded != B:
        return out_full[:B]
    return out_full


def init_params(key):
    """Deterministic init mimicking PyTorch nn.Linear default (U[-1/sqrt(in), 1/sqrt(in)]).
    Weights stored pre-transposed to (in, out); biases kept 2-D (1, out)."""
    k1, k2, k3, k4 = jax.random.split(key, 4)
    bound1 = 1.0 / jnp.sqrt(LATENT_SIZE)
    w1 = jax.random.uniform(k1, (LATENT_SIZE, HIDDEN_SIZE), jnp.float32,
                            -bound1, bound1)
    b1 = jax.random.uniform(k2, (1, HIDDEN_SIZE), jnp.float32, -bound1, bound1)
    bound2 = 1.0 / jnp.sqrt(HIDDEN_SIZE)
    w2 = jax.random.uniform(k3, (HIDDEN_SIZE, OUTPUT_SIZE), jnp.float32,
                            -bound2, bound2)
    b2 = jax.random.uniform(k4, (1, OUTPUT_SIZE), jnp.float32, -bound2, bound2)
    return w1, b1, w2, b2


def _reference(x, w1, b1, w2, b2):
    # Mirrors kernel arithmetic: bf16 matmul inputs, f32 accumulation/activations.
    h = jnp.maximum(
        jnp.dot(x.astype(jnp.bfloat16), w1.astype(jnp.bfloat16),
                preferred_element_type=jnp.float32) + b1, 0.0)
    z = jnp.dot(h.astype(jnp.bfloat16), w2.astype(jnp.bfloat16),
                preferred_element_type=jnp.float32) + b2
    return jax.nn.sigmoid(z)


if __name__ == "__main__":
    key = jax.random.PRNGKey(0)
    k_x, k_x2, k_p = jax.random.split(key, 3)
    w1, b1, w2, b2 = init_params(k_p)
    # Params prepared ONCE, outside the forward path (bf16 cast hoisted).
    w1b, b1p, w2b, b2p = prepare_decoder_params(w1, b1, w2, b2)

    # Case 1: B=16 -> single tile, no padding, no post-kernel slice.
    x = jax.random.normal(k_x, (BATCH, LATENT_SIZE), jnp.float32)
    out = jax.block_until_ready(decoder_forward(x, w1b, b1p, w2b, b2p))
    assert out.shape == (BATCH, OUTPUT_SIZE)
    assert jnp.allclose(out, _reference(x, w1, b1, w2, b2), atol=2e-3, rtol=2e-3)
    ref_f32 = jax.nn.sigmoid(jnp.maximum(x @ w1 + b1, 0.0) @ w2 + b2)
    assert jnp.allclose(out, ref_f32, atol=5e-2, rtol=5e-2)

    # Case 2: B=20 with tiny tiles -> exercises row padding, multi-tile grid,
    # ragged last block and resident weights across grid steps.
    x2 = jax.random.normal(k_x2, (20, LATENT_SIZE), jnp.float32)
    out2 = jax.block_until_ready(decoder_forward(x2, w1b, b1p, w2b, b2p,
                                                 block_rows=8))
    assert out2.shape == (20, OUTPUT_SIZE)
    assert jnp.allclose(out2, _reference(x2, w1, b1, w2, b2), atol=2e-3, rtol=2e-3)

    print("KERNEL_OK")
</pallas_src>

<mosaic_0001>
module attributes {stable_mosaic.version = 11 : i64} {
  func.func @decoder_kernel(%arg0: i32, %arg1: memref<16x10xf32, #tpu.memory_space<vmem>>, %arg2: memref<10x256xbf16, #tpu.memory_space<vmem>>, %arg3: memref<1x256xf32, #tpu.memory_space<vmem>>, %arg4: memref<256x784xbf16, #tpu.memory_space<vmem>>, %arg5: memref<1x784xf32, #tpu.memory_space<vmem>>, %arg6: memref<16x784xf32, #tpu.memory_space<vmem>>) attributes {dimension_semantics = [#tpu.dimension_semantics<parallel>], iteration_bounds = array<i64: 1>, scalar_prefetch = 0 : i64, scratch_operands = 0 : i64, tpu.core_type = #tpu.core_type<tc>, window_params = [{transform_indices = @transform_0, window_bounds = array<i64: 16, 10>}, {pipeline_mode = #tpu.pipeline_mode<synchronous>, transform_indices = @transform_1, window_bounds = array<i64: 10, 256>}, {pipeline_mode = #tpu.pipeline_mode<synchronous>, transform_indices = @transform_2, window_bounds = array<i64: 1, 256>}, {pipeline_mode = #tpu.pipeline_mode<synchronous>, transform_indices = @transform_3, window_bounds = array<i64: 256, 784>}, {pipeline_mode = #tpu.pipeline_mode<synchronous>, transform_indices = @transform_4, window_bounds = array<i64: 1, 784>}, {transform_indices = @transform_5, window_bounds = array<i64: 16, 784>}]} {
    %c0 = arith.constant 0 : index
    %c0_0 = arith.constant 0 : index
    %0 = vector.load %arg1[%c0, %c0_0] : memref<16x10xf32, #tpu.memory_space<vmem>>, vector<16x10xf32>
    %1 = arith.truncf %0 : vector<16x10xf32> to vector<16x10xbf16>
    %c0_1 = arith.constant 0 : index
    %c0_2 = arith.constant 0 : index
    %2 = vector.load %arg2[%c0_1, %c0_2] : memref<10x256xbf16, #tpu.memory_space<vmem>>, vector<10x256xbf16>
    %cst = arith.constant dense<0.000000e+00> : vector<16x256xf32>
    %3 = tpu.matmul %1, %2, %cst {dimension_numbers = #tpu.dot_dimension_numbers<[1], [0], [0], [1], [0, 0, 1, 1], [], []>} : vector<16x10xbf16>, vector<10x256xbf16>, vector<16x256xf32> -> vector<16x256xf32>
    %c0_3 = arith.constant 0 : index
    %c0_4 = arith.constant 0 : index
    %4 = vector.load %arg3[%c0_3, %c0_4] : memref<1x256xf32, #tpu.memory_space<vmem>>, vector<1x256xf32>
    %5 = vector.broadcast %4 : vector<1x256xf32> to vector<16x256xf32>
    %6 = arith.addf %3, %5 : vector<16x256xf32>
    %cst_5 = arith.constant 0.000000e+00 : f32
    %7 = vector.broadcast %cst_5 : f32 to vector<16x256xf32>
    %8 = arith.maximumf %6, %7 : vector<16x256xf32>
    %9 = arith.truncf %8 : vector<16x256xf32> to vector<16x256xbf16>
    %c0_6 = arith.constant 0 : index
    %c0_7 = arith.constant 0 : index
    %10 = vector.load %arg4[%c0_6, %c0_7] : memref<256x784xbf16, #tpu.memory_space<vmem>>, vector<256x784xbf16>
    %cst_8 = arith.constant dense<0.000000e+00> : vector<16x784xf32>
    %11 = tpu.matmul %9, %10, %cst_8 {dimension_numbers = #tpu.dot_dimension_numbers<[1], [0], [0], [1], [0, 0, 1, 1], [], []>} : vector<16x256xbf16>, vector<256x784xbf16>, vector<16x784xf32> -> vector<16x784xf32>
    %c0_9 = arith.constant 0 : index
    %c0_10 = arith.constant 0 : index
    %12 = vector.load %arg5[%c0_9, %c0_10] : memref<1x784xf32, #tpu.memory_space<vmem>>, vector<1x784xf32>
    %13 = vector.broadcast %12 : vector<1x784xf32> to vector<16x784xf32>
    %14 = arith.addf %11, %13 : vector<16x784xf32>
    %15 = arith.negf %14 : vector<16x784xf32>
    %16 = math.exp %15 : vector<16x784xf32>
    %cst_11 = arith.constant 1.000000e+00 : f32
    %17 = vector.broadcast %cst_11 : f32 to vector<16x784xf32>
    %18 = arith.addf %17, %16 : vector<16x784xf32>
    %19 = arith.divf %17, %18 : vector<16x784xf32>
    %c0_12 = arith.constant 0 : index
    %c0_13 = arith.constant 0 : index
    %20 = vector.load %arg6[%c0_12, %c0_13] : memref<16x784xf32, #tpu.memory_space<vmem>>, vector<16x784xf32>
    tpu.vector_store %arg6[%c0_12, %c0_13], %19 {strides = array<i32>} : memref<16x784xf32, #tpu.memory_space<vmem>>, vector<16x784xf32>,
    return
  }
  func.func @transform_0(%arg0: i32) -> (i32, i32) {
    %c0_i32 = arith.constant 0 : i32
    %c0_i32_0 = arith.constant 0 : i32
    return %arg0, %c0_i32 : i32, i32
  }
  func.func @transform_1(%arg0: i32) -> (i32, i32) {
    %c0_i32 = arith.constant 0 : i32
    %c0_i32_0 = arith.constant 0 : i32
    %c0_i32_1 = arith.constant 0 : i32
    return %c0_i32, %c0_i32_0 : i32, i32
  }
  func.func @transform_2(%arg0: i32) -> (i32, i32) {
    %c0_i32 = arith.constant 0 : i32
    %c0_i32_0 = arith.constant 0 : i32
    %c0_i32_1 = arith.constant 0 : i32
    return %c0_i32, %c0_i32_0 : i32, i32
  }
  func.func @transform_3(%arg0: i32) -> (i32, i32) {
    %c0_i32 = arith.constant 0 : i32
    %c0_i32_0 = arith.constant 0 : i32
    %c0_i32_1 = arith.constant 0 : i32
    return %c0_i32, %c0_i32_0 : i32, i32
  }
  func.func @transform_4(%arg0: i32) -> (i32, i32) {
    %c0_i32 = arith.constant 0 : i32
    %c0_i32_0 = arith.constant 0 : i32
    %c0_i32_1 = arith.constant 0 : i32
    return %c0_i32, %c0_i32_0 : i32, i32
  }
  func.func @transform_5(%arg0: i32) -> (i32, i32) {
    %c0_i32 = arith.constant 0 : i32
    %c0_i32_0 = arith.constant 0 : i32
    return %arg0, %c0_i32 : i32, i32
  }
}

</mosaic_0001>

<bundles_post_ra>
// kernel: decoder_forward.1
= control target key start
LH: loop header
LB: loop body
LE: loop exit
PB: predicated region body
PF: predicated region fallthrough
CT: control target
= control target key end

     0   :  { %vm51_vm0 = vcmask 1044480   ;;  %v1532_v3 = vmov 0   ;;  %vm47_vm1 = vcmask 80896   ;;  %s1964_s0 = inlined_call_operand.vmem [shape: f32[16,10], index: 0, kind: input, shape index: {}]   ;;  %s1965_s1 = inlined_call_operand.vmem [shape: bf16[10,256], index: 1, kind: input, shape index: {}]   ;;  %s1966_s2 = inlined_call_operand.vmem [shape: f32[1,256], index: 2, kind: input, shape index: {}]   ;;  %s1967_s3 = inlined_call_operand.vmem [shape: bf16[256,784], index: 3, kind: input, shape index: {}]   ;;  %s1968_s4 = inlined_call_operand.vmem [shape: f32[1,784], index: 4, kind: input, shape index: {}]   ;;  %s1969_s5 = inlined_call_operand.hbm [shape: f32[16,784], index: 5, kind: output, shape index: {}]  }
   0x1   :  { %v1289_v0 = vld [vmem:[%s1965_s1 + $0x4] ss:$8 sps:$4 sm:$0x1f]   ;;  %v1291_v1 = vld [vmem:[%s1965_s1] ss:$8 sps:$4 sm:$0x1f]   ;;  %90 = vmatprep.mubr.bf16.mxu0 %v1532_v3 }
   0x2   :  { %v22_v2 = vld [vmem:[%s1964_s0] sm:$0xff]  ;;  %1135 = vmatprep.subr.msk.bf16.mxu0 %vm51_vm0, %v1289_v0  ;;  %v23_v4 = vld [vmem:[%s1964_s0 + $0x8] sm:$0xff]  ;;  %v53_v5 = vsel %vm51_vm0, %v1291_v1, 0  ;;  %v1298_v11 = vld [vmem:[%s1967_s3 + $0x3c] ss:$28 sps:$4 sm:$0xff]  }
   0x3   :  { %v24_v6 = vpack.c.bf16 %v23_v4, %v22_v2  ;;  %v1292_v7 = vld [vmem:[%s1967_s3 + $0x4] ss:$28 sps:$4 sm:$0xff]   ;;  %59 = vmatpush1.bf16.msra.mxu0 %v53_v5  ;;  %v1296_v9 = vld [vmem:[%s1967_s3 + $0xc] ss:$28 sps:$4 sm:$0xff]   ;;  %v1303_v14 = vld [vmem:[%s1967_s3 + $0x38] ss:$28 sps:$4 sm:$0xff]  }
   0x4   :  { %v1294_v8 = vld [vmem:[%s1967_s3 + $0x8] ss:$28 sps:$4 sm:$0xff]   ;;  %v1297_v10 = vld [vmem:[%s1967_s3] ss:$28 sps:$4 sm:$0xff]   ;;  %848 = vmatprep.subr.bf16.mxu1 %v1292_v7  ;;  %891 = vmatprep.subr.bf16.mxu0 %v1296_v9  ;;  %v1304_v15 = vld [vmem:[%s1967_s3 + $0x74] ss:$28 sps:$4 sm:$0xff]  }
   0x5   :  { %849 = vmatpush1.bf16.msra.mxu1 %v1297_v10  ;;  %v1300_v12 = vld [vmem:[%s1967_s3 + $0x40] ss:$28 sps:$4 sm:$0xff]   ;;  %v1309_v17 = vld [vmem:[%s1967_s3 + $0x70] ss:$28 sps:$4 sm:$0xff]   ;;  %v1306_v19 = vld [vmem:[%s1967_s3 + $0x78] ss:$28 sps:$4 sm:$0xff]  }
   0x6   :  { %1136 = vmatmul.mubr.msk.bf16.vlgmr.msra.gmra.mrb[0].mxu0 %vm47_vm1, %v24_v6  ;;  %850 = vmatprep.subr.bf16.mxu1 %v1298_v11  ;;  %v1302_v13 = vld [vmem:[%s1967_s3 + $0x44] ss:$28 sps:$4 sm:$0xff]   ;;  %v1308_v16 = vld [vmem:[%s1967_s3 + $0x7c] ss:$28 sps:$4 sm:$0xff]   ;;  %v1310_v18 = vld [vmem:[%s1967_s3 + $0xac] ss:$28 sps:$4 sm:$0xff]  }
   0x7   :  { %892 = vmatpush1.bf16.msra.mxu0 %v1294_v8  ;;  %v1314_v20 = vld [vmem:[%s1967_s3 + $0xb4] ss:$28 sps:$4 sm:$0xff]   ;;  %v1315_v21 = vld [vmem:[%s1967_s3 + $0xa8] ss:$28 sps:$4 sm:$0xff]   ;;  %v1321_v25 = vld [vmem:[%s1967_s3 + $0xe0] ss:$28 sps:$4 sm:$0xff]  }
   0x8   :  { %893 = vmatprep.subr.bf16.mxu0 %v1302_v13  ;;  %v1316_v22 = vld [vmem:[%s1967_s3 + $0xe4] ss:$28 sps:$4 sm:$0xff]   ;;  %v1312_v23 = vld [vmem:[%s1967_s3 + $0xb0] ss:$28 sps:$4 sm:$0xff]   ;;  %v1322_v26 = vld [vmem:[%s1967_s3 + $0x11c] ss:$28 sps:$4 sm:$0xff]  }
   0x9   :  { %851 = vmatpush1.bf16.msra.mxu1 %v1303_v14  ;;  %v1320_v24 = vld [vmem:[%s1967_s3 + $0xec] ss:$28 sps:$4 sm:$0xff]   ;;  %v1326_v28 = vld [vmem:[%s1967_s3 + $0x124] ss:$28 sps:$4 sm:$0xff]   ;;  %v1327_v29 = vld [vmem:[%s1967_s3 + $0x118] ss:$28 sps:$4 sm:$0xff]  }
   0xa   :  { %852 = vmatprep.subr.bf16.mxu1 %v1304_v15  ;;  %v1318_v27 = vld [vmem:[%s1967_s3 + $0xe8] ss:$28 sps:$4 sm:$0xff]   ;;  %v1328_v30 = vld [vmem:[%s1967_s3 + $0x154] ss:$28 sps:$4 sm:$0xff]   ;;  %v1324_v31 = vld [vmem:[%s1967_s3 + $0x120] ss:$28 sps:$4 sm:$0xff]  }
   0xb   :  { %894 = vmatpush1.bf16.msra.mxu0 %v1300_v12  ;;  %v1332_v32 = vld [vmem:[%s1967_s3 + $0x15c] ss:$28 sps:$4 sm:$0xff]   ;;  %v1333_v33 = vld [vmem:[%s1967_s3 + $0x150] ss:$28 sps:$4 sm:$0xff]   ;;  %v1339_v37 = vld [vmem:[%s1967_s3 + $0x188] ss:$28 sps:$4 sm:$0xff]  }
   0xc   :  { %895 = vmatprep.subr.bf16.mxu0 %v1308_v16  ;;  %v1334_v34 = vld [vmem:[%s1967_s3 + $0x18c] ss:$28 sps:$4 sm:$0xff]   ;;  %v1330_v35 = vld [vmem:[%s1967_s3 + $0x158] ss:$28 sps:$4 sm:$0xff]   ;;  %v1340_v38 = vld [vmem:[%s1967_s3 + $0x1c4] ss:$28 sps:$4 sm:$0xff]  }
   0xd   :  { %853 = vmatpush1.bf16.msra.mxu1 %v1309_v17  ;;  %v1338_v36 = vld [vmem:[%s1967_s3 + $0x194] ss:$28 sps:$4 sm:$0xff]   ;;  %v1344_v40 = vld [vmem:[%s1967_s3 + $0x1cc] ss:$28 sps:$4 sm:$0xff]   ;;  %v1345_v41 = vld [vmem:[%s1967_s3 + $0x1c0] ss:$28 sps:$4 sm:$0xff]  }
   0xe   :  { %854 = vmatprep.subr.bf16.mxu1 %v1310_v18  ;;  %v1336_v39 = vld [vmem:[%s1967_s3 + $0x190] ss:$28 sps:$4 sm:$0xff]   ;;  %v1346_v42 = vld [vmem:[%s1967_s3 + $0x1fc] ss:$28 sps:$4 sm:$0xff]   ;;  %v1342_v43 = vld [vmem:[%s1967_s3 + $0x1c8] ss:$28 sps:$4 sm:$0xff]  }
   0xf   :  { %896 = vmatpush1.bf16.msra.mxu0 %v1306_v19  ;;  %v1350_v44 = vld [vmem:[%s1967_s3 + $0x204] ss:$28 sps:$4 sm:$0xff]   ;;  %v1351_v45 = vld [vmem:[%s1967_s3 + $0x1f8] ss:$28 sps:$4 sm:$0xff]   ;;  %v1357_v49 = vld [vmem:[%s1967_s3 + $0x230] ss:$28 sps:$4 sm:$0xff]  }
  0x10   :  { %897 = vmatprep.subr.bf16.mxu0 %v1314_v20  ;;  %v1348_v46 = vld [vmem:[%s1967_s3 + $0x200] ss:$28 sps:$4 sm:$0xff]   ;;  %v1352_v47 = vld [vmem:[%s1967_s3 + $0x234] ss:$28 sps:$4 sm:$0xff]   ;;  %v1358_v50 = vld [vmem:[%s1967_s3 + $0x26c] ss:$28 sps:$4 sm:$0xff]  }
  0x11   :  { %855 = vmatpush1.bf16.msra.mxu1 %v1315_v21  ;;  %v1356_v48 = vld [vmem:[%s1967_s3 + $0x23c] ss:$28 sps:$4 sm:$0xff]   ;;  %v1362_v52 = vld [vmem:[%s1967_s3 + $0x274] ss:$28 sps:$4 sm:$0xff]   ;;  %v1363_v53 = vld [vmem:[%s1967_s3 + $0x268] ss:$28 sps:$4 sm:$0xff]  }
  0x12   :  { %856 = vmatprep.subr.bf16.mxu1 %v1316_v22  ;;  %v1354_v51 = vld [vmem:[%s1967_s3 + $0x238] ss:$28 sps:$4 sm:$0xff]   ;;  %v1364_v54 = vld [vmem:[%s1967_s3 + $0x2a4] ss:$28 sps:$4 sm:$0xff]   ;;  %v1360_v55 = vld [vmem:[%s1967_s3 + $0x270] ss:$28 sps:$4 sm:$0xff]  }
  0x13   :  { %898 = vmatpush1.bf16.msra.mxu0 %v1312_v23  ;;  %v1368_v56 = vld [vmem:[%s1967_s3 + $0x2ac] ss:$28 sps:$4 sm:$0xff]   ;;  %v1369_v57 = vld [vmem:[%s1967_s3 + $0x2a0] ss:$28 sps:$4 sm:$0xff]   ;;  %v1375_v61 = vld [vmem:[%s1967_s3 + $0x2d8] ss:$28 sps:$4 sm:$0xff]  }
  0x14   :  { %899 = vmatprep.subr.bf16.mxu0 %v1320_v24  ;;  %v1370_v58 = vld [vmem:[%s1967_s3 + $0x2dc] ss:$28 sps:$4 sm:$0xff]   ;;  %v1366_v59 = vld [vmem:[%s1967_s3 + $0x2a8] ss:$28 sps:$4 sm:$0xff]  }
  0x15   :  { %857 = vmatpush1.bf16.msra.mxu1 %v1321_v25  ;;  %v1374_v60 = vld [vmem:[%s1967_s3 + $0x2e4] ss:$28 sps:$4 sm:$0xff]  }
  0x16   :  { %858 = vmatprep.subr.bf16.mxu1 %v1322_v26  ;;  %v1372_v62 = vld [vmem:[%s1967_s3 + $0x2e0] ss:$28 sps:$4 sm:$0xff]  }
  0x17   :  { %900 = vmatpush1.bf16.msra.mxu0 %v1318_v27 }
  0x18   :  { %901 = vmatprep.subr.bf16.mxu0 %v1326_v28 }
  0x19   :  { %859 = vmatpush1.bf16.msra.mxu1 %v1327_v29 }
  0x1a   :  { %860 = vmatprep.subr.bf16.mxu1 %v1328_v30 }
  0x1b   :  { %902 = vmatpush1.bf16.msra.mxu0 %v1324_v31 }
  0x1c   :  { %903 = vmatprep.subr.bf16.mxu0 %v1332_v32 }
  0x1d   :  { %861 = vmatpush1.bf16.msra.mxu1 %v1333_v33 }
  0x1e   :  { %862 = vmatprep.subr.bf16.mxu1 %v1334_v34 }
  0x1f   :  { %904 = vmatpush1.bf16.msra.mxu0 %v1330_v35 }
  0x20   :  { %905 = vmatprep.subr.bf16.mxu0 %v1338_v36 }
  0x21   :  { %863 = vmatpush1.bf16.msra.mxu1 %v1339_v37 }
  0x22   :  { %864 = vmatprep.subr.bf16.mxu1 %v1340_v38 }
  0x23   :  { %906 = vmatpush1.bf16.msra.mxu0 %v1336_v39 }
  0x24   :  { %907 = vmatprep.subr.bf16.mxu0 %v1344_v40 }
  0x25   :  { %865 = vmatpush1.bf16.msra.mxu1 %v1345_v41 }
  0x26   :  { %866 = vmatprep.subr.bf16.mxu1 %v1346_v42 }
  0x27   :  { %908 = vmatpush1.bf16.msra.mxu0 %v1342_v43 }
  0x28   :  { %909 = vmatprep.subr.bf16.mxu0 %v1350_v44 }
  0x29   :  { %867 = vmatpush1.bf16.msra.mxu1 %v1351_v45 }
  0x2a   :  { %868 = vmatprep.subr.bf16.mxu1 %v1352_v47 }
  0x2b   :  { %910 = vmatpush1.bf16.msra.mxu0 %v1348_v46 }
  0x2c   :  { %911 = vmatprep.subr.bf16.mxu0 %v1356_v48 }
  0x2d   :  { %869 = vmatpush1.bf16.msra.mxu1 %v1357_v49 }
  0x2e   :  { %870 = vmatprep.subr.bf16.mxu1 %v1358_v50 }
  0x2f   :  { %912 = vmatpush1.bf16.msra.mxu0 %v1354_v51 }
  0x30   :  { %913 = vmatprep.subr.bf16.mxu0 %v1362_v52 }
  0x31   :  { %871 = vmatpush1.bf16.msra.mxu1 %v1363_v53 }
  0x32   :  { %872 = vmatprep.subr.bf16.mxu1 %v1364_v54 }
  0x33   :  { %914 = vmatpush1.bf16.msra.mxu0 %v1360_v55 }
  0x34   :  { %915 = vmatprep.subr.bf16.mxu0 %v1368_v56 }
  0x35   :  { %873 = vmatpush1.bf16.msra.mxu1 %v1369_v57 }
  0x36   :  { %874 = vmatprep.subr.bf16.mxu1 %v1370_v58 }
  0x37   :  { %916 = vmatpush1.bf16.msra.mxu0 %v1366_v59 }
  0x38   :  { %917 = vmatprep.subr.bf16.mxu0 %v1374_v60 }
  0x39   :  { %875 = vmatpush1.bf16.msra.mxu1 %v1375_v61 }
  0x3b   :  { %918 = vmatpush1.bf16.msra.mxu0 %v1372_v62 }
  0x3c   :  { %10 = vsyncpa [#allocation3], 0  ;;  %v1376_v63 = vld [vmem:[%s1967_s3 + $0x314] ss:$28 sps:$4 sm:$0xff]   ;;  %v1380_v0 = vld [vmem:[%s1967_s3 + $0x31c] ss:$28 sps:$4 sm:$0xff]   ;;  %v29_v9 = vlaneseq }
  0x3d   :  { %v1378_v1 = vld [vmem:[%s1967_s3 + $0x318] ss:$28 sps:$4 sm:$0xff]   ;;  %v1381_v2 = vld [vmem:[%s1967_s3 + $0x310] ss:$28 sps:$4 sm:$0xff]   ;;  %876 = vmatprep.subr.bf16.mxu1 %v1376_v63  ;;  %919 = vmatprep.subr.bf16.mxu0 %v1380_v0  ;;  %v1387_v6 = vld [vmem:[%s1967_s3 + $0x348] ss:$28 sps:$4 sm:$0xff]  }
  0x3e   :  { %877 = vmatpush1.bf16.msra.mxu1 %v1381_v2  ;;  %v1382_v3 = vld [vmem:[%s1967_s3 + $0x34c] ss:$28 sps:$4 sm:$0xff]   ;;  %v1386_v4 = vld [vmem:[%s1967_s3 + $0x354] ss:$28 sps:$4 sm:$0xff]   ;;  %v1776_v10 = vshrl.u32 %v29_v9, 7  ;;  %vm1108_vm2 = vcmask 130048  }
  0x3f   :  { %920 = vmatpush1.bf16.msra.mxu0 %v1378_v1  ;;  %v1384_v5 = vld [vmem:[%s1967_s3 + $0x350] ss:$28 sps:$4 sm:$0xff]   ;;  %878 = vmatprep.subr.bf16.mxu1 %v1382_v3  ;;  %v1391_v8 = vld [vmem:[%s1967_s3 + $0x1d8] ss:$28 sps:$4 sm:$0xff]   ;;  %v27_v12 = vld [vmem:[%s1966_s2] sm:$0x3] }
  0x40   :  { %921 = vmatprep.subr.bf16.mxu0 %v1386_v4  ;;  %v1390_v7 = vld [vmem:[%s1967_s3 + $0x14] ss:$28 sps:$4 sm:$0xff]   ;;  %v31_v11 = vsub.s32 0, %v1776_v10  ;;  %v35_v13 = vsub.s32 1, %v1776_v10  ;;  %v1395_v32 = vld [vmem:[%s1967_s3 + $0x4c] ss:$28 sps:$4 sm:$0xff]  }
  0x41   :  { %v1388_v30 = vld [vmem:[%s1967_s3 + $0x10] ss:$28 sps:$4 sm:$0xff]   ;;  %v1392_v31 = vld [vmem:[%s1967_s3 + $0x18] ss:$28 sps:$4 sm:$0xff]   ;;  %v1393_v34 = vld [vmem:[%s1967_s3 + $0x48] ss:$28 sps:$4 sm:$0xff]  }
  0x42   :  { %879 = vmatpush1.bf16.msra.mxu1 %v1387_v6  ;;  %v32_v14 = vrot.slane %v27_v12, %v31_v11  ;;  %v36_v15 = vrot.slane %v27_v12, %v35_v13  ;;  %v1396_v33 = vld [vmem:[%s1967_s3 + $0x210] ss:$28 sps:$4 sm:$0xff]   ;;  %v1400_v36 = vld [vmem:[%s1967_s3 + $0x84] ss:$28 sps:$4 sm:$0xff]   ;;  %v1405_v40 = vld [vmem:[%s1967_s3 + $0xbc] ss:$28 sps:$4 sm:$0xff]  }
  0x43   :  { %922 = vmatpush1.bf16.msra.mxu0 %v1384_v5  ;;  %934 = vmatprep.subr.bf16.mxu1 %v1390_v7  ;;  %v1397_v35 = vld [vmem:[%s1967_s3 + $0x50] ss:$28 sps:$4 sm:$0xff]   ;;  %v1401_v37 = vld [vmem:[%s1967_s3 + $0x248] ss:$28 sps:$4 sm:$0xff]   ;;  %v1398_v38 = vld [vmem:[%s1967_s3 + $0x80] ss:$28 sps:$4 sm:$0xff]  }
  0x44   :  { %1263 = vmatprep.subr.bf16.mxu0 %v1391_v8  ;;  %v1402_v39 = vld [vmem:[%s1967_s3 + $0x88] ss:$28 sps:$4 sm:$0xff]   ;;  %v1406_v41 = vld [vmem:[%s1967_s3 + $0x280] ss:$28 sps:$4 sm:$0xff]   ;;  %v1403_v42 = vld [vmem:[%s1967_s3 + $0xb8] ss:$28 sps:$4 sm:$0xff]  }
  0x45   :  { %v1407_v43 = vld [vmem:[%s1967_s3 + $0xc0] ss:$28 sps:$4 sm:$0xff]   ;;  %v1410_v44 = vld [vmem:[%s1967_s3 + $0xf4] ss:$28 sps:$4 sm:$0xff]   ;;  %v1415_v48 = vld [vmem:[%s1967_s3 + $0x12c] ss:$28 sps:$4 sm:$0xff]  }
  0x46   :  { %v1411_v45 = vld [vmem:[%s1967_s3 + $0x2b8] ss:$28 sps:$4 sm:$0xff]   ;;  %v1408_v46 = vld [vmem:[%s1967_s3 + $0xf0] ss:$28 sps:$4 sm:$0xff]   ;;  %v1413_v50 = vld [vmem:[%s1967_s3 + $0x128] ss:$28 sps:$4 sm:$0xff]  }
  0x47   :  { %v1412_v47 = vld [vmem:[%s1967_s3 + $0xf8] ss:$28 sps:$4 sm:$0xff]   ;;  %v1416_v49 = vld [vmem:[%s1967_s3 + $0x2f0] ss:$28 sps:$4 sm:$0xff]   ;;  %v1420_v52 = vld [vmem:[%s1967_s3 + $0x164] ss:$28 sps:$4 sm:$0xff]  }
  0x48   :  { %v1417_v51 = vld [vmem:[%s1967_s3 + $0x130] ss:$28 sps:$4 sm:$0xff]   ;;  %v1421_v53 = vld [vmem:[%s1967_s3 + $0x328] ss:$28 sps:$4 sm:$0xff]   ;;  %v1418_v54 = vld [vmem:[%s1967_s3 + $0x160] ss:$28 sps:$4 sm:$0xff]  }
  0x49   :  { %v1422_v55 = vld [vmem:[%s1967_s3 + $0x168] ss:$28 sps:$4 sm:$0xff]   ;;  %v1425_v56 = vld [vmem:[%s1967_s3 + $0x19c] ss:$28 sps:$4 sm:$0xff]   ;;  %v1430_v60 = vld [vmem:[%s1967_s3 + $0x1d4] ss:$28 sps:$4 sm:$0xff]  }
  0x4a   :  { %v1426_v57 = vld [vmem:[%s1967_s3 + $0x360] ss:$28 sps:$4 sm:$0xff]   ;;  %v1423_v58 = vld [vmem:[%s1967_s3 + $0x198] ss:$28 sps:$4 sm:$0xff]   ;;  %v1428_v61 = vld [vmem:[%s1967_s3 + $0x1d0] ss:$28 sps:$4 sm:$0xff]  }
  0x4b   :  { %v1427_v59 = vld [vmem:[%s1967_s3 + $0x1a0] ss:$28 sps:$4 sm:$0xff]   ;;  %v1433_v62 = vld [vmem:[%s1967_s3 + $0x20c] ss:$28 sps:$4 sm:$0xff]   ;;  %v1437_v3 = vld [vmem:[%s1967_s3 + $0x278] ss:$28 sps:$4 sm:$0xff]  }
  0x4c   :  { %v1431_v63 = vld [vmem:[%s1967_s3 + $0x208] ss:$28 sps:$4 sm:$0xff]   ;;  %v1434_v1 = vld [vmem:[%s1967_s3 + $0x240] ss:$28 sps:$4 sm:$0xff]   ;;  %v1442_v4 = vld [vmem:[%s1967_s3 + $0x2b4] ss:$28 sps:$4 sm:$0xff]  }
  0x4d   :  { %v1436_v0 = vld [vmem:[%s1967_s3 + $0x244] ss:$28 sps:$4 sm:$0xff]   ;;  %v1439_v2 = vld [vmem:[%s1967_s3 + $0x27c] ss:$28 sps:$4 sm:$0xff]   ;;  %v1440_v5 = vld [vmem:[%s1967_s3 + $0x2b0] ss:$28 sps:$4 sm:$0xff]  }
  0x4e   :  { %v1445_v6 = vld [vmem:[%s1967_s3 + $0x2ec] ss:$28 sps:$4 sm:$0xff]   ;;  %v1448_v8 = vld [vmem:[%s1967_s3 + $0x324] ss:$28 sps:$4 sm:$0xff]   ;;  %v1451_v12 = vld [vmem:[%s1967_s3 + $0x35c] ss:$28 sps:$4 sm:$0xff]  }
  0x4f   :  { %v1443_v7 = vld [vmem:[%s1967_s3 + $0x2e8] ss:$28 sps:$4 sm:$0xff]   ;;  %v1446_v9 = vld [vmem:[%s1967_s3 + $0x320] ss:$28 sps:$4 sm:$0xff]  }
  0xd9   :  { %v92_v16 = vpop.f32.mrb[0].mxu0 }
  0xda   :  { %v93_v17 = vadd.f32 %v92_v16, %v32_v14  ;;  %v94_v18 = vpop.f32.mrb[1].mxu0  ;;  %v1935_v16 = vld [vmem:[%s1968_s4] sm:$0x7f] }
  0xdb   :  { %v95_v19 = vadd.f32 %v94_v18, %v36_v15  ;;  %v96_v20 = vpop.f32.mrb[2].mxu0  ;;  %v240_v18 = vrot.slane %v1935_v16, %v31_v11 }
  0xdc   :  { %v97_v21 = vadd.f32 %v96_v20, %v32_v14  ;;  %v98_v22 = vpop.f32.mrb[3].mxu0  ;;  %v101_v24 = vmax.f32 %v93_v17, 0.0  ;;  %v1449_v14 = vld [vmem:[%s1967_s3 + $0x358] ss:$28 sps:$4 sm:$0xff]   ;;  %v251_v17 = vsub.s32 3, %v1776_v10  ;;  %v244_v20 = vrot.slane %v1935_v16, %v35_v13  ;;  %s1533_s3 = smov [#allocation2]  }
  0xdd   :  { %v99_v23 = vadd.f32 %v98_v22, %v36_v15  ;;  %v102_v26 = vmax.f32 %v95_v19, 0.0  ;;  %v247_v15 = vsub.s32 2, %v1776_v10  ;;  %s1122_s4 = sshll.u32 %s1533_s3, 4  ;;  %s1123_s4 = int_to_ptr.vmem [resolvable:$true] %s1122_s4 }
  0xde   :  { %v103_v25 = vmax.f32 %v97_v21, 0.0  ;;  %v252_v21 = vrot.slane %v1935_v16, %v251_v17  ;;  %s1508_s0 = scalar_lea.vmem %s1123_s4, 1792  ;;  %p1513_p1 = scmp.lt.s32.totalorder %s1123_s4, %s1123_s4 }
  0xdf   :  { %v104_v27 = vmax.f32 %v99_v23, 0.0  ;;  %v248_v19 = vrot.slane %v1935_v16, %v247_v15  ;;  %p1509_p0 = scmp.ne.s32.totalorder %s1123_s4, %s1508_s0  ;;  %p1514_p2 = scmp.lt.s32.totalorder %s1508_s0, %s1508_s0 }
  0xe0   :  { %v1787_v28 = vpack.c.bf16 %v103_v25, %v101_v24 }
  0xe1   :  { %v106_v29 = vpack.c.bf16 %v104_v27, %v102_v26  ;;  %p1515_p3 = por %p1514_p2, %p1513_p1 }
  0xe3   :  { %880 = vmatprep.mubr.bf16.mxu1 %v106_v29  ;;  %923 = vmatprep.mubr.bf16.mxu0 %v106_v29  ;;  %p1516_p4 = pnand %p1515_p3, %p1509_p0 }
  0xe4   :  { %881 = vmatmul.mubr.bf16.vlgmr.msra.gmra.mrb[0].mxu1 %v1787_v28  ;;  %924 = vmatmul.mubr.bf16.vlgmr.msra.gmra.mrb[4].mxu0 %v1787_v28 }
  0xe5   :  { %935 = vmatpush1.bf16.msra.mxu1 %v1388_v30  ;;  %1264 = vmatpush3.bf16.msra.mxu0 %v1392_v31 }
  0xe6   :  { %966 = vmatprep.mubr.bf16.mxu1 %v106_v29  ;;  %1009 = vmatprep.mubr.bf16.mxu0 %v106_v29 }
  0xe7   :  { %936 = vmatprep.subr.bf16.mxu1 %v1395_v32  ;;  %1265 = vmatprep.subr.bf16.mxu0 %v1396_v33 }
  0xe9   :  { %937 = vmatpush1.bf16.msra.mxu1 %v1393_v34  ;;  %1266 = vmatpush3.bf16.msra.mxu0 %v1397_v35 }
  0xea   :  { %938 = vmatprep.subr.bf16.mxu1 %v1400_v36  ;;  %1267 = vmatprep.subr.bf16.mxu0 %v1401_v37 }
  0xed   :  { %939 = vmatpush1.bf16.msra.mxu1 %v1398_v38  ;;  %1268 = vmatpush3.bf16.msra.mxu0 %v1402_v39 }
  0xee   :  { %940 = vmatprep.subr.bf16.mxu1 %v1405_v40  ;;  %1269 = vmatprep.subr.bf16.mxu0 %v1406_v41 }
  0xf1   :  { %941 = vmatpush1.bf16.msra.mxu1 %v1403_v42  ;;  %1270 = vmatpush3.bf16.msra.mxu0 %v1407_v43 }
  0xf2   :  { %942 = vmatprep.subr.bf16.mxu1 %v1410_v44  ;;  %1271 = vmatprep.subr.bf16.mxu0 %v1411_v45 }
  0xf5   :  { %943 = vmatpush1.bf16.msra.mxu1 %v1408_v46  ;;  %1272 = vmatpush3.bf16.msra.mxu0 %v1412_v47 }
  0xf6   :  { %944 = vmatprep.subr.bf16.mxu1 %v1415_v48  ;;  %1273 = vmatprep.subr.bf16.mxu0 %v1416_v49 }
  0xf9   :  { %945 = vmatpush1.bf16.msra.mxu1 %v1413_v50  ;;  %1274 = vmatpush3.bf16.msra.mxu0 %v1417_v51 }
  0xfa   :  { %946 = vmatprep.subr.bf16.mxu1 %v1420_v52  ;;  %1275 = vmatprep.subr.bf16.mxu0 %v1421_v53 }
  0xfd   :  { %947 = vmatpush1.bf16.msra.mxu1 %v1418_v54  ;;  %1276 = vmatpush3.bf16.msra.mxu0 %v1422_v55 }
  0xfe   :  { %948 = vmatprep.subr.bf16.mxu1 %v1425_v56  ;;  %1277 = vmatprep.subr.bf16.mxu0 %v1426_v57 }
 0x101   :  { %949 = vmatpush1.bf16.msra.mxu1 %v1423_v58  ;;  %1278 = vmatpush3.bf16.msra.mxu0 %v1427_v59 }
 0x102   :  { %950 = vmatprep.subr.bf16.mxu1 %v1430_v60 }
 0x104   :  { %1010 = vmatmul.mubr.bf16.vlgmr.msra.gmra.mrb[8].mxu0 %v1787_v28 }
 0x105   :  { %951 = vmatpush1.bf16.msra.mxu1 %v1428_v61  ;;  %v263_v61 = vsub.s32 6, %v1776_v10 }
 0x106   :  { %952 = vmatprep.subr.bf16.mxu1 %v1433_v62 }
 0x109   :  { %953 = vmatpush1.bf16.msra.mxu1 %v1431_v63 }
 0x10a   :  { %954 = vmatprep.subr.bf16.mxu1 %v1436_v0 }
 0x10d   :  { %955 = vmatpush1.bf16.msra.mxu1 %v1434_v1 }
 0x10e   :  { %956 = vmatprep.subr.bf16.mxu1 %v1439_v2 }
 0x111   :  { %957 = vmatpush1.bf16.msra.mxu1 %v1437_v3  ;;  %v264_v3 = vrot.slane %v1935_v16, %v263_v61 }
 0x112   :  { %958 = vmatprep.subr.bf16.mxu1 %v1442_v4 }
 0x115   :  { %959 = vmatpush1.bf16.msra.mxu1 %v1440_v5 }
 0x116   :  { %960 = vmatprep.subr.bf16.mxu1 %v1445_v6 }
 0x119   :  { %961 = vmatpush1.bf16.msra.mxu1 %v1443_v7 }
 0x11a   :  { %962 = vmatprep.subr.bf16.mxu1 %v1448_v8 }
 0x11d   :  { %963 = vmatpush1.bf16.msra.mxu1 %v1446_v9 }
 0x11e   :  { %964 = vmatprep.subr.bf16.mxu1 %v1451_v12 }
 0x121   :  { %965 = vmatpush1.bf16.msra.mxu1 %v1449_v14 }
 0x124   :  { %967 = vmatmul.mubr.bf16.vlgmr.msra.gmra.mrb[4].mxu1 %v1787_v28 }
 0x1b7   :  { %v882_v22 = vpop.f32.mrb[0].mxu1  ;;  %v925_v23 = vpop.f32.mrb[4].mxu0 }
 0x1b8   :  { %v883_v24 = vadd.f32 %v882_v22, %v240_v18  ;;  %v926_v25 = vadd.f32 %v925_v23, %v248_v19  ;;  %v884_v26 = vpop.f32.mrb[1].mxu1  ;;  %v927_v27 = vpop.f32.mrb[5].mxu0 }
 0x1b9   :  { %v885_v28 = vadd.f32 %v884_v26, %v244_v20  ;;  %v928_v29 = vadd.f32 %v927_v27, %v252_v21  ;;  %v886_v30 = vpop.f32.mrb[2].mxu1  ;;  %v929_v31 = vpop.f32.mrb[6].mxu0 }
 0x1ba   :  { %v1249_v32 = vmul.f32 -1.442695, %v883_v24  ;;  %v1251_v11 = vmul.f32 -1.442695, %v926_v25  ;;  %v887_v33 = vadd.f32 %v886_v30, %v240_v18  ;;  %v930_v34 = vadd.f32 %v929_v31, %v248_v19  ;;  %v888_v35 = vpop.f32.mrb[3].mxu1  ;;  %v931_v36 = vpop.f32.mrb[7].mxu0 }
 0x1bb   :  { %v1250_v37 = vmul.f32 -1.442695, %v885_v28  ;;  %v1252_v13 = vmul.f32 -1.442695, %v928_v29  ;;  %v889_v38 = vadd.f32 %v888_v35, %v244_v20  ;;  %v932_v39 = vadd.f32 %v931_v36, %v252_v21 }
 0x1bc   :  { %1452 = vpow2.f32 %v1249_v32  ;;  %v1256_v40 = vmul.f32 -1.442695, %v887_v33  ;;  %v1258_v41 = vmul.f32 -1.442695, %v930_v34  ;;  %v255_v24 = vsub.s32 4, %v1776_v10 }
 0x1bd   :  { %1454 = vpow2.f32 %v1251_v11  ;;  %v1257_v42 = vmul.f32 -1.442695, %v889_v38  ;;  %v1259_v43 = vmul.f32 -1.442695, %v932_v39  ;;  %v259_v25 = vsub.s32 5, %v1776_v10 }
 0x1be   :  { %1456 = vpow2.f32 %v1250_v37  ;;  %v256_v26 = vrot.slane %v1935_v16, %v255_v24 }
 0x1bf   :  { %1458 = vpow2.f32 %v1252_v13  ;;  %v260_v27 = vrot.slane %v1935_v16, %v259_v25 }
 0x1c0   :  { %1460 = vpow2.f32 %v1256_v40 }
 0x1c1   :  { %1462 = vpow2.f32 %v1258_v41 }
 0x1c2   :  { %1464 = vpow2.f32 %v1257_v42 }
 0x1c3   :  { %1466 = vpow2.f32 %v1259_v43 }
 0x1c6   :  { %v1453_v44 = vpop.eup %1452 }
 0x1c7   :  { %v1455_v45 = vpop.eup %1454  ;;  %v1060_v46 = vadd.f32 1.0, %v1453_v44 }
 0x1c8   :  { %v1457_v47 = vpop.eup %1456  ;;  %v1062_v48 = vadd.f32 1.0, %v1455_v45 }
 0x1c9   :  { %v1459_v49 = vpop.eup %1458  ;;  %1468 = vrcp.f32 %v1060_v46  ;;  %v1061_v50 = vadd.f32 1.0, %v1457_v47 }
 0x1ca   :  { %v1461_v51 = vpop.eup %1460  ;;  %1470 = vrcp.f32 %v1062_v48  ;;  %v1063_v52 = vadd.f32 1.0, %v1459_v49 }
 0x1cb   :  { %v1463_v53 = vpop.eup %1462  ;;  %1472 = vrcp.f32 %v1061_v50  ;;  %v1067_v54 = vadd.f32 1.0, %v1461_v51 }
 0x1cc   :  { %v1465_v55 = vpop.eup %1464  ;;  %1474 = vrcp.f32 %v1063_v52  ;;  %v1069_v56 = vadd.f32 1.0, %v1463_v53 }
 0x1cd   :  { %v1467_v57 = vpop.eup %1466  ;;  %1476 = vrcp.f32 %v1067_v54  ;;  %v1068_v58 = vadd.f32 1.0, %v1465_v55 }
 0x1ce   :  { %1478 = vrcp.f32 %v1069_v56  ;;  %v1070_v59 = vadd.f32 1.0, %v1467_v57 }
 0x1cf   :  { %1480 = vrcp.f32 %v1068_v58 }
 0x1d0   :  { %1482 = vrcp.f32 %v1070_v59 }
 0x1d3   :  { %v1469_v60 = vpop.eup %1468 }
 0x1d4   :  { %v1471_v62 = vpop.eup %1470  ;;  %1102 = vst [vmem:[#allocation2] sm:$0xff] %v1469_v60 }
 0x1d5   :  { %v1473_v63 = vpop.eup %1472  ;;  %1104 = vst [vmem:[#allocation2 + $0x10] sm:$0xff] %v1471_v62 }
 0x1d6   :  { %v1475_v0 = vpop.eup %1474  ;;  %1103 = vst [vmem:[#allocation2 + $0x8] sm:$0xff] %v1473_v63 }
 0x1d7   :  { %v1477_v1 = vpop.eup %1476  ;;  %1105 = vst [vmem:[#allocation2 + $0x18] sm:$0xff] %v1475_v0  ;;  %v1279_v2 = vpop.f32.mrb[8].mxu0 }
 0x1d8   :  { %v1479_v4 = vpop.eup %1478  ;;  %1110 = vst [vmem:[#allocation2 + $0x38] sm:$0xff] %v1477_v1  ;;  %v1280_v5 = vpop.f32.mrb[9].mxu0 }
 0x1d9   :  { %v1481_v6 = vpop.eup %1480  ;;  %1112 = vst [vmem:[#allocation2 + $0x48] sm:$0xff] %v1479_v4  ;;  %v1281_v7 = vadd.f32 %v1280_v5, %v1279_v2  ;;  %v1282_v8 = vpop.f32.mrb[10].mxu0 }
 0x1da   :  { %v1483_v9 = vpop.eup %1482  ;;  %1111 = vst [vmem:[#allocation2 + $0x40] sm:$0xff] %v1481_v6  ;;  %v1283_v12 = vpop.f32.mrb[11].mxu0 }
 0x1db   :  { %1113 = vst [vmem:[#allocation2 + $0x50] sm:$0xff] %v1483_v9  ;;  %v1012_v14 = vadd.f32 %v1281_v7, %v264_v3  ;;  %v1284_v15 = vadd.f32 %v1283_v12, %v1282_v8 }
 0x1dd   :  { %v1255_v17 = vmul.f32 -1.442695, %v1012_v14  ;;  %v1015_v18 = vadd.f32 %v1284_v15, %v264_v3 }
 0x1df   :  { %1484 = vpow2.f32 %v1255_v17  ;;  %v1262_v19 = vmul.f32 -1.442695, %v1015_v18 }
 0x1e1   :  { %1486 = vpow2.f32 %v1262_v19 }
 0x1e9   :  { %v1485_v20 = vpop.eup %1484 }
 0x1ea   :  { %v1066_v21 = vadd.f32 1.0, %v1485_v20 }
 0x1eb   :  { %v1487_v22 = vpop.eup %1486 }
 0x1ec   :  { %1488 = vrcp.f32 %v1066_v21  ;;  %v1073_v23 = vadd.f32 1.0, %v1487_v22 }
 0x1ee   :  { %1490 = vrcp.f32 %v1073_v23 }
 0x1f6   :  { %v1489_v28 = vpop.eup %1488 }
 0x1f7   :  { %1109 = vst.msk [vmem:[#allocation2 + $0x30] sm:$0xff] %vm1108_vm2, %v1489_v28  ;;  %v968_v29 = vpop.f32.mrb[4].mxu1 }
 0x1f8   :  { %v1491_v30 = vpop.eup %1490  ;;  %v969_v31 = vadd.f32 %v968_v29, %v256_v26  ;;  %v970_v32 = vpop.f32.mrb[5].mxu1 }
 0x1f9   :  { %1116 = vst.msk [vmem:[#allocation2 + $0x68] sm:$0xff] %vm1108_vm2, %v1491_v30  ;;  %v971_v11 = vadd.f32 %v970_v32, %v260_v27  ;;  %v972_v33 = vpop.f32.mrb[6].mxu1 }
 0x1fa   :  { %v1253_v34 = vmul.f32 -1.442695, %v969_v31  ;;  %v973_v35 = vadd.f32 %v972_v33, %v256_v26  ;;  %v974_v36 = vpop.f32.mrb[7].mxu1 }
 0x1fb   :  { %v1254_v37 = vmul.f32 -1.442695, %v971_v11  ;;  %v975_v13 = vadd.f32 %v974_v36, %v260_v27 }
 0x1fc   :  { %1492 = vpow2.f32 %v1253_v34  ;;  %v1260_v10 = vmul.f32 -1.442695, %v973_v35 }
 0x1fd   :  { %1494 = vpow2.f32 %v1254_v37  ;;  %v1261_v38 = vmul.f32 -1.442695, %v975_v13 }
 0x1fe   :  { %1496 = vpow2.f32 %v1260_v10 }
 0x1ff   :  { %1498 = vpow2.f32 %v1261_v38 }
 0x206   :  { %v1493_v16 = vpop.eup %1492 }
 0x207   :  { %v1495_v39 = vpop.eup %1494  ;;  %v1064_v40 = vadd.f32 1.0, %v1493_v16 }
 0x208   :  { %v1497_v41 = vpop.eup %1496  ;;  %v1065_v42 = vadd.f32 1.0, %v1495_v39 }
 0x209   :  { %v1499_v43 = vpop.eup %1498  ;;  %1500 = vrcp.f32 %v1064_v40  ;;  %v1071_v44 = vadd.f32 1.0, %v1497_v41 }
 0x20a   :  { %1502 = vrcp.f32 %v1065_v42  ;;  %v1072_v45 = vadd.f32 1.0, %v1499_v43 }
 0x20b   :  { %1504 = vrcp.f32 %v1071_v44 }
 0x20c   :  { %1506 = vrcp.f32 %v1072_v45 }
 0x213   :  { %v1501_v46 = vpop.eup %1500 }
 0x214   :  { %v1503_v47 = vpop.eup %1502  ;;  %1106 = vst [vmem:[#allocation2 + $0x20] sm:$0xff] %v1501_v46 }
 0x215   :  { %v1505_v48 = vpop.eup %1504  ;;  %1107 = vst [vmem:[#allocation2 + $0x28] sm:$0xff] %v1503_v47 }
 0x216   :  { %v1507_v49 = vpop.eup %1506  ;;  %1114 = vst [vmem:[#allocation2 + $0x58] sm:$0xff] %v1505_v48 }
 0x217   :  { %1115 = vst [vmem:[#allocation2 + $0x60] sm:$0xff] %v1507_v49 }
 0x218   :  { %1519 = shalt.err (!%p1516_p4)
}
 0x219   :  { %s1520_s10 = scalar_lea.hbm %s1969_s5, 1792 }
 0x21a   :  { %p1521_p5 = scmp.ne.s32.totalorder %s1969_s5, %s1520_s10  ;;  %p1524_p6 = scmp.lt.u32.totalorder %s1520_s10, %s1969_s5 }
 0x21c   :  { %p1526_p7 = pnand %p1524_p6, %p1521_p5 }
 0x21e   :  { %1529 = shalt.err (!%p1526_p7)
}
 0x21f   :  { %s1534_s15 = smov 896   ;;  %s1535_s16 = smov 56  }
 0x220   :  { %1128 = dma.vmem_to_hbm [thread:$0]  %s1123_s4, 1792, %s1969_s5, [#allocation3], %s1534_s15, %s1534_s15, %s1535_s16  }
 0x221   :  { %1530 = dma.done.wait [#allocation3], 1792  }
 0x222   :  { %1531 = vsyncadd [#allocation3], 4294965504 }
 0x223   :  { %1132 = vsyncpa [#allocation3], 1 }

</bundles_post_ra>
